<compile_context>
chip_gen: v7x
topology: tpu7x:2x2x1
jax: 0.10.0
libtpu: 0.0.40
codegen_flags: <defaults>
</compile_context>

<pallas_src>
import jax
import jax.numpy as jnp
from jax.experimental import pallas as pl
from jax.experimental.pallas import tpu as pltpu


# ----------------------------------------------------------------------------
# Kernels
# ----------------------------------------------------------------------------
def _mlp_head_kernel(x_ref, w1_ref, b1_ref, w2_ref, b2_ref, o_ref):
    """Per-pixel MLP on one (C, tn) pixel tile, pixels in the lane dim.

    x_ref : (1, C, tn)        input tile (batch dim squeezed by indexing [0])
    w1_ref: (hidden, C)       first 1x1 conv weight (PyTorch layout)
    b1_ref: (hidden, 1)       first bias as a column (broadcast over lanes)
    w2_ref: (hidden, 1)       second 1x1 conv weight as a column
    b2_ref: (1,)  SMEM        second bias (scalar)
    o_ref : (1, 1, tn)        output tile
    """
    x = x_ref[0]                                                   # (C, tn)
    # (hidden, C) @ (C, tn) -> (hidden, tn)  — lane-dense MXU matmul, f32 acc.
    h = jnp.dot(w1_ref[...], x, preferred_element_type=jnp.float32)
    h = jnp.maximum(h + b1_ref[...], 0.0)                          # bias + ReLU (f32 VPU)
    # Width-1 projection on VPU + sublane reduce (XLU) — no MXU pass for N=1.
    y = jnp.sum(h * w2_ref[...], axis=0, keepdims=True)            # (1, tn)
    y = y + b2_ref[0]
    o_ref[0] = y.astype(o_ref.dtype)


def _linear_head_kernel(x_ref, w_ref, o_ref):
    """Bias-free Linear(C_in, 1) per pixel (num_hidden_layers == 0 branch).

    x_ref: (1, C, tn)   w_ref: (C, 1)   o_ref: (1, 1, tn)
    """
    x = x_ref[0]                                                   # (C, tn)
    y = jnp.sum(x * w_ref[...], axis=0, keepdims=True)             # (1, tn), VPU+XLU
    o_ref[0] = y.astype(o_ref.dtype)


# ----------------------------------------------------------------------------
# Tile selection: lane-dense pixel tile
# ----------------------------------------------------------------------------
def _pick_pixel_tile(hw, target=2048):
    """Largest multiple-of-128 tile that divides hw and is <= target.

    If hw is not a multiple of 128, fall back to the full extent (allowed by
    the BlockSpec rule: block dim == full array dim).  Keeps stores unmasked
    and avoids the old power-of-two-shrink fallback that could violate the
    (8, 128) divisibility rule.
    """
    if hw % 128 != 0:
        return hw
    tn = max(128, min(target, hw))
    tn -= tn % 128
    while hw % tn != 0:
        tn -= 128
    return tn


# ----------------------------------------------------------------------------
# Wrappers
# ----------------------------------------------------------------------------
def linear_projection_layers_hidden(x_nchw, w1, b1, w2, b2, *, tn_target=2048):
    """num_hidden_layers > 0 branch.  x_nchw: (B, C_in, H, W) -> (B, 1, H, W)."""
    B, C, H, W = x_nchw.shape
    hidden = w1.shape[0]
    HW = H * W

    # Free layout change: NCHW is contiguous, so (B, C, H*W) is a pure reshape.
    x3d = x_nchw.reshape(B, C, HW)
    tn = _pick_pixel_tile(HW, tn_target)
    grid = (B, HW // tn)

    b1_col = b1.reshape(hidden, 1)
    w2_col = w2.reshape(hidden, 1)           # (1, hidden) -> (hidden, 1), same data
    b2_smem = b2.reshape(1).astype(jnp.float32)

    out3d = pl.pallas_call(
        _mlp_head_kernel,
        out_shape=jax.ShapeDtypeStruct((B, 1, HW), x_nchw.dtype),
        grid=grid,
        in_specs=[
            pl.BlockSpec((1, C, tn), lambda b, j: (b, 0, j)),      # x tile
            pl.BlockSpec((hidden, C), lambda b, j: (0, 0)),        # W1 (resident)
            pl.BlockSpec((hidden, 1), lambda b, j: (0, 0)),        # b1 column
            pl.BlockSpec((hidden, 1), lambda b, j: (0, 0)),        # W2 column
            pl.BlockSpec(memory_space=pltpu.MemorySpace.SMEM),     # b2 scalar
        ],
        out_specs=pl.BlockSpec((1, 1, tn), lambda b, j: (b, 0, j)),
        compiler_params=pltpu.CompilerParams(
            dimension_semantics=("parallel", "parallel")),
    )(x3d, w1, b1_col, w2_col, b2_smem)

    # (B, 1, H*W) -> (B, 1, H, W): pure reshape, no transpose needed.
    return out3d.reshape(B, 1, H, W)


def linear_projection_layers_zero_hidden(x_nchw, w0, *, tn_target=2048):
    """num_hidden_layers == 0 branch: bias-free Linear(C_in, 1) per pixel.

    TODO(synk): PyTorch nn.Linear applied directly to an NCHW tensor would
    contract the trailing W axis; we implement the (clearly intended) per-pixel
    channel contraction, matching the 1x1-conv branch's semantics.
    """
    B, C, H, W = x_nchw.shape
    HW = H * W

    x3d = x_nchw.reshape(B, C, HW)
    tn = _pick_pixel_tile(HW, tn_target)
    grid = (B, HW // tn)

    w_col = w0.reshape(C, 1)                 # (1, C) -> (C, 1), same data

    out3d = pl.pallas_call(
        _linear_head_kernel,
        out_shape=jax.ShapeDtypeStruct((B, 1, HW), x_nchw.dtype),
        grid=grid,
        in_specs=[
            pl.BlockSpec((1, C, tn), lambda b, j: (b, 0, j)),
            pl.BlockSpec((C, 1), lambda b, j: (0, 0)),
        ],
        out_specs=pl.BlockSpec((1, 1, tn), lambda b, j: (b, 0, j)),
        compiler_params=pltpu.CompilerParams(
            dimension_semantics=("parallel", "parallel")),
    )(x3d, w0.reshape(C, 1) if False else w_col)

    return out3d.reshape(B, 1, H, W)


# ----------------------------------------------------------------------------
# Pure-JAX references (mirror PyTorch 1x1-conv / per-pixel-linear semantics)
# ----------------------------------------------------------------------------
def _ref_hidden(x_nchw, w1, b1, w2, b2):
    h = jnp.einsum("bchw,dc->bdhw", x_nchw, w1) + b1[None, :, None, None]
    h = jnp.maximum(h, 0.0)
    y = jnp.einsum("bdhw,od->bohw", h, w2) + b2[None, :, None, None]
    return y


def _ref_zero(x_nchw, w0):
    return jnp.einsum("bchw,oc->bohw", x_nchw, w0)


# ----------------------------------------------------------------------------
if __name__ == "__main__":
    # Module hyperparameters (small demo shapes consistent with the module).
    image_channels = 4
    rnn_hidden_size = 4
    linear_hidden_size = 32
    B, H, W = 2, 16, 16
    C_in = image_channels + rnn_hidden_size

    key = jax.random.PRNGKey(0)
    kx, kw1, kb1, kw2, kb2, kw0 = jax.random.split(key, 6)

    x = jax.random.normal(kx, (B, C_in, H, W), dtype=jnp.float32)
    # PyTorch-layout parameters.
    w1 = jax.random.normal(kw1, (linear_hidden_size, C_in), dtype=jnp.float32) * 0.1
    b1 = jax.random.normal(kb1, (linear_hidden_size,), dtype=jnp.float32) * 0.1
    w2 = jax.random.normal(kw2, (1, linear_hidden_size), dtype=jnp.float32) * 0.1
    b2 = jax.random.normal(kb2, (1,), dtype=jnp.float32) * 0.1
    w0 = jax.random.normal(kw0, (1, C_in), dtype=jnp.float32) * 0.1

    # --- num_hidden_layers > 0 branch (Conv1x1 -> ReLU -> Conv1x1) ---
    out = linear_projection_layers_hidden(x, w1, b1, w2, b2)
    out = jax.block_until_ready(out)
    ref = _ref_hidden(x, w1, b1, w2, b2)
    assert out.shape == (B, 1, H, W), out.shape
    assert jnp.allclose(out, ref, atol=1e-4, rtol=1e-4), "hidden-branch mismatch"

    # --- num_hidden_layers == 0 branch (bias-free Linear per pixel) ---
    out0 = linear_projection_layers_zero_hidden(x, w0)
    out0 = jax.block_until_ready(out0)
    ref0 = _ref_zero(x, w0)
    assert out0.shape == (B, 1, H, W), out0.shape
    assert jnp.allclose(out0, ref0, atol=1e-4, rtol=1e-4), "zero-hidden mismatch"

    print("KERNEL_OK")
</pallas_src>

<mosaic_0001>
module attributes {stable_mosaic.version = 11 : i64} {
  func.func @_mlp_head_kernel(%arg0: i32, %arg1: i32, %arg2: memref<1x8x256xf32, #tpu.memory_space<vmem>>, %arg3: memref<32x8xf32, #tpu.memory_space<vmem>>, %arg4: memref<32x1xf32, #tpu.memory_space<vmem>>, %arg5: memref<32x1xf32, #tpu.memory_space<vmem>>, %arg6: memref<1xf32, #tpu.memory_space<smem>>, %arg7: memref<1x1x256xf32, #tpu.memory_space<vmem>>) attributes {dimension_semantics = [#tpu.dimension_semantics<parallel>, #tpu.dimension_semantics<parallel>], iteration_bounds = array<i64: 2, 1>, scalar_prefetch = 0 : i64, scratch_operands = 0 : i64, tpu.core_type = #tpu.core_type<tc>, window_params = [{transform_indices = @transform_0, window_bounds = array<i64: 1, 8, 256>}, {pipeline_mode = #tpu.pipeline_mode<synchronous>, transform_indices = @transform_1, window_bounds = array<i64: 32, 8>}, {pipeline_mode = #tpu.pipeline_mode<synchronous>, transform_indices = @transform_2, window_bounds = array<i64: 32, 1>}, {pipeline_mode = #tpu.pipeline_mode<synchronous>, transform_indices = @transform_3, window_bounds = array<i64: 32, 1>}, {transform_indices = @transform_4, window_bounds = array<i64: 1>}, {transform_indices = @transform_5, window_bounds = array<i64: 1, 1, 256>}]} {
    %c0 = arith.constant 0 : index
    %c0_0 = arith.constant 0 : index
    %c0_1 = arith.constant 0 : index
    %0 = vector.load %arg2[%c0, %c0_0, %c0_1] : memref<1x8x256xf32, #tpu.memory_space<vmem>>, vector<1x8x256xf32>
    %1 = vector.shape_cast %0 : vector<1x8x256xf32> to vector<8x256xf32>
    %c0_2 = arith.constant 0 : index
    %c0_3 = arith.constant 0 : index
    %2 = vector.load %arg3[%c0_2, %c0_3] : memref<32x8xf32, #tpu.memory_space<vmem>>, vector<32x8xf32>
    %cst = arith.constant dense<0.000000e+00> : vector<32x256xf32>
    %3 = tpu.matmul %2, %1, %cst {dimension_numbers = #tpu.dot_dimension_numbers<[1], [0], [0], [1], [0, 0, 1, 1], [], []>} : vector<32x8xf32>, vector<8x256xf32>, vector<32x256xf32> -> vector<32x256xf32>
    %c0_4 = arith.constant 0 : index
    %c0_5 = arith.constant 0 : index
    %4 = vector.load %arg4[%c0_4, %c0_5] : memref<32x1xf32, #tpu.memory_space<vmem>>, vector<32x1xf32>
    %5 = vector.broadcast %4 : vector<32x1xf32> to vector<32x256xf32>
    %6 = arith.addf %3, %5 : vector<32x256xf32>
    %cst_6 = arith.constant 0.000000e+00 : f32
    %7 = vector.broadcast %cst_6 : f32 to vector<32x256xf32>
    %8 = arith.maximumf %6, %7 : vector<32x256xf32>
    %c0_7 = arith.constant 0 : index
    %c0_8 = arith.constant 0 : index
    %9 = vector.load %arg5[%c0_7, %c0_8] : memref<32x1xf32, #tpu.memory_space<vmem>>, vector<32x1xf32>
    %10 = vector.broadcast %9 : vector<32x1xf32> to vector<32x256xf32>
    %11 = arith.mulf %8, %10 : vector<32x256xf32>
    %cst_9 = arith.constant dense<0.000000e+00> : vector<256xf32>
    %12 = vector.multi_reduction <add>, %11, %cst_9 [0] : vector<32x256xf32> to vector<256xf32>
    %13 = vector.shape_cast %12 : vector<256xf32> to vector<1x256xf32>
    %c0_10 = arith.constant 0 : index
    %14 = memref.load %arg6[%c0_10] : memref<1xf32, #tpu.memory_space<smem>>
    %15 = vector.broadcast %14 : f32 to vector<1x256xf32>
    %16 = arith.addf %13, %15 : vector<1x256xf32>
    %c0_11 = arith.constant 0 : index
    %c0_12 = arith.constant 0 : index
    %c0_13 = arith.constant 0 : index
    %17 = vector.load %arg7[%c0_11, %c0_12, %c0_13] : memref<1x1x256xf32, #tpu.memory_space<vmem>>, vector<1x1x256xf32>
    %18 = vector.shape_cast %17 : vector<1x1x256xf32> to vector<1x256xf32>
    %19 = vector.shape_cast %16 : vector<1x256xf32> to vector<1x1x256xf32>
    tpu.vector_store %arg7[%c0_11, %c0_12, %c0_13], %19 {strides = array<i32>} : memref<1x1x256xf32, #tpu.memory_space<vmem>>, vector<1x1x256xf32>,
    return
  }
  func.func @transform_0(%arg0: i32, %arg1: i32) -> (i32, i32, i32) {
    %c0_i32 = arith.constant 0 : i32
    %c0_i32_0 = arith.constant 0 : i32
    return %arg0, %c0_i32, %arg1 : i32, i32, i32
  }
  func.func @transform_1(%arg0: i32, %arg1: i32) -> (i32, i32) {
    %c0_i32 = arith.constant 0 : i32
    %c0_i32_0 = arith.constant 0 : i32
    %c0_i32_1 = arith.constant 0 : i32
    return %c0_i32, %c0_i32_0 : i32, i32
  }
  func.func @transform_2(%arg0: i32, %arg1: i32) -> (i32, i32) {
    %c0_i32 = arith.constant 0 : i32
    %c0_i32_0 = arith.constant 0 : i32
    %c0_i32_1 = arith.constant 0 : i32
    return %c0_i32, %c0_i32_0 : i32, i32
  }
  func.func @transform_3(%arg0: i32, %arg1: i32) -> (i32, i32) {
    %c0_i32 = arith.constant 0 : i32
    %c0_i32_0 = arith.constant 0 : i32
    %c0_i32_1 = arith.constant 0 : i32
    return %c0_i32, %c0_i32_0 : i32, i32
  }
  func.func @transform_4(%arg0: i32, %arg1: i32) -> i32 {
    %c0_i32 = arith.constant 0 : i32
    %c0_i32_0 = arith.constant 0 : i32
    return %c0_i32 : i32
  }
  func.func @transform_5(%arg0: i32, %arg1: i32) -> (i32, i32, i32) {
    %c0_i32 = arith.constant 0 : i32
    %c0_i32_0 = arith.constant 0 : i32
    return %arg0, %c0_i32, %arg1 : i32, i32, i32
  }
}

</mosaic_0001>

<bundles_post_ra>
// kernel: tpu_custom_call.1
= control target key start
LH: loop header
LB: loop body
LE: loop exit
PB: predicated region body
PF: predicated region fallthrough
CT: control target
= control target key end

     0   :  { %s915_s0 = inlined_call_operand.vmem [shape: f32[2,8,256], index: 0, kind: input, shape index: {}]   ;;  %s916_s1 = inlined_call_operand.vmem [shape: f32[32,8], index: 1, kind: input, shape index: {}]   ;;  %s917_s2 = inlined_call_operand.vmem [shape: f32[32,1], index: 2, kind: input, shape index: {}]   ;;  %s918_s3 = inlined_call_operand.vmem [shape: f32[32,1], index: 3, kind: input, shape index: {}]   ;;  %s919_s4 = inlined_call_operand.<no memory space> [shape: f32[1], index: 4, kind: input, shape index: {}]   ;;  %s920_s5 = inlined_call_operand.hbm [shape: f32[2,1,256], index: 5, kind: output, shape index: {}]  }
   0x1   :  { %10 = sst [smem:[#allocation2]] %s919_s4 }
   0x2   :  { %11 = vsyncpa [#allocation4], 0 }
   0x3   :  { %13 = vsyncpa [#allocation4 + $0x1], 0  ;;  %s763_s20 = smov 0   ;;  %s765_s21 = smov 0  }
   0x4   :  { %s767_s22 = smov 0   ;;  %s769_s23 = smov 0  }
   0x5   :  { %s771_s24 = smov 0   ;;  %s773_s25 = smov 0  }
   0x6 LB: > { %s565_s4 = sadd.s32 4294967295, %s724_s25   ;;  %s566_s26 = sadd.s32 4294967294, %s724_s25   ;;  %s724_s25 = sphi %s773_s25, %s19_s25   ;;  %s720_s24 = sphi %s771_s24, %s927_s24   ;;  %s716_s23 = sphi %s769_s23, %s926_s23   ;;  %s712_s22 = sphi %s767_s22, %s925_s22   ;;  %s708_s21 = sphi %s765_s21, %s924_s21   ;;  %s704_s20 = sphi %s763_s20, %s923_s20  }
   0x7   : > { %s31_s27 = sadd.s32 1, %s720_s24  ;;  %s152_s28 = sadd.s32 1, %s712_s22 }
   0x8   : > { %p33_p0 = scmp.ge.s32.totalorder %s31_s27, 2  ;;  %p162_p1 = scmp.ne.s32.totalorder %s712_s22, %s708_s21 }
   0x9   : > { %p163_p2 = scmp.eq.s32.totalorder %s565_s4, 1  ;;  %p168_p3 = scmp.ne.s32.totalorder %s708_s21, %s704_s20 }
   0xa   : > { %s929_s27 = smov (%p33_p0, %s31_s27), 0  ;;  %p169_p5 = scmp.eq.s32.totalorder %s566_s26, 1 }
   0xb   : > { %p803_p4 = por %p163_p2, %p162_p1  ;;  %s147_s30 = ssub.s32 %s720_s24, %s929_s27 }
   0xc   : > { %p569_p6 = scmp.ge.s32.totalorder %s724_s25, 1  ;;  %p150_p7 = scmp.eq.s32.totalorder %s147_s30, 0 }
   0xd   : > { %p810_p8 = por %p169_p5, %p168_p3  ;;  %p212_p9 = scmp.lt.s32.totalorder %s724_s25, 3 }
   0xe   : > { %s816_s7 = scalar_select %p150_p7, %s712_s22, %s152_s28  }
   0xf   : > { %p213_p10 = pnand %p569_p6, %p212_p9 }
  0x10   : > { %p245_p11 = scmp.lt.s32.totalorder (!%p213_p10), %s716_s23, 1  ;;  %v726_v0 = vmov (!%p213_p10), 0.0   ;;  %v261_v1 = vld [vmem:[%s917_s2] sm:$0xff] (!%p213_p10)  ;;  %v263_v2 = vld [vmem:[%s917_s2 + $0x10] sm:$0xff] (!%p213_p10)  ;;  %v727_v3 = vmov (!%p213_p10), 0   ;;  %vm285_vm0 = vcmask (!%p213_p10), 64512  }
  0x11   : > { %216 = sbr.rel (%p213_p10) target bundleno = 294 (0x126), region = 40  ;;  %362 = vmatprep.mubr.f32.mxu0 (!%p213_p10), %v726_v0  ;;  %374 = vmatprep.mubr.f32.mxu1 (!%p213_p10), %v726_v0  ;;  %v257_v4 = vld [vmem:[%s916_s1] sm:$0xff] (!%p213_p10)  ;;  %v259_v7 = vld [vmem:[%s916_s1 + $0x10] sm:$0xff] (!%p213_p10)  ;;  %v262_v8 = vld [vmem:[%s917_s2 + $0x8] sm:$0xff] (!%p213_p10)  ;;  %s445_s26 = sld [smem:[#allocation2]] (!%p213_p10) }
  0x12   : > { %644 = vset.pattern.permute.xlu0 (!%p213_p10), %v727_v3  ;;  %645 = vset.pattern.permute.xlu1 (!%p213_p10), %v727_v3  ;;  %v264_v9 = vld [vmem:[%s917_s2 + $0x18] sm:$0xff] (!%p213_p10)  ;;  %v258_v10 = vld [vmem:[%s916_s1 + $0x8] sm:$0xff] (!%p213_p10)  ;;  %v395_v12 = vld [vmem:[%s918_s3] sm:$0xff] (!%p213_p10)  ;;  %s241_s28 = sand.u32 (!%p213_p10), 1, %s708_s21   ;;  %s583_s8 = sshll.u32 (!%p213_p10), %s716_s23, 5 }
  0x13   : > { %267 = vperm.xlu0 (!%p213_p10), %644, %v261_v1   ;;  %277 = vperm.xlu1 (!%p213_p10), %645, %v263_v2   ;;  %v260_v11 = vld [vmem:[%s916_s1 + $0x18] sm:$0xff] (!%p213_p10)  ;;  %v396_v13 = vld [vmem:[%s918_s3 + $0x8] sm:$0xff] (!%p213_p10)  ;;  %v397_v14 = vld [vmem:[%s918_s3 + $0x10] sm:$0xff] (!%p213_p10)  ;;  %s570_s30 = sshll.u32 (!%p213_p10), %s241_s28, 1  ;;  %s473_s14 = scalar_lea.sflag (!%p213_p10), [#allocation4], %s241_s28 }
  0x14   : > { %v398_v15 = vld [vmem:[%s918_s3 + $0x18] sm:$0xff] (!%p213_p10)  ;;  %s243_s9 = scalar_lea.vmem (!%p213_p10), [#allocation3], %s570_s30 }
  0x15   : > { %s489_s10 = sshll.u32 (!%p213_p10), %s243_s9, 4  ;;  %s870_s10 = int_to_ptr.vmem [resolvable:$true] %s489_s10 }
  0x16   : > { %s646_s15 = scalar_lea.vmem (!%p213_p10), %s870_s10, 32 }
  0x17   : > { %272 = vperm.xlu0 (!%p213_p10), %644, %v262_v8   ;;  %282 = vperm.xlu1 (!%p213_p10), %645, %v264_v9   ;;  %p647_p12 = scmp.ne.s32.totalorder (!%p213_p10), %s870_s10, %s646_s15 }
  0x18   : > { %s246_s12 = scalar_select %p245_p11, %s716_s23, 1 }
  0x19   : > { %p648_p13 = pnand %p647_p12, %p803_p4  ;;  %s729_s23 = smov [#allocation3]  }
  0x1a   : > { %s582_s13 = sshll.u32 %s246_s12, 4 }
  0x1b   : > { %s252_s16 = scalar_lea.vmem %s915_s0, %s582_s13  ;;  %401 = vperm.xlu0 %644, %v395_v12   ;;  %406 = vperm.xlu1 %645, %v396_v13   ;;  %s868_s13 = scalar_lea.hbm %s920_s5, %s583_s8 }
  0x1c   : > { %v256_v5 = vld [vmem:[%s252_s16 + $0x8] sm:$0xff]  ;;  %v255_v6 = vld [vmem:[%s252_s16] sm:$0xff]  ;;  %p649_p0 = pneg %p648_p13  ;;  %s650_s16 = sshll.u32 %s729_s23, 4  ;;  %s651_s16 = int_to_ptr.vmem [resolvable:$false] %s650_s16 }
  0x1d   : > { %298 = vmatprep.subr.mxu0 %v256_v5  ;;  %584 = vmatprep.subr.mxu1 %v256_v5  ;;  %s652_s17 = scalar_lea.vmem %s651_s16, 64  ;;  %p653_p1 = scmp.lt.s32.totalorder %s870_s10, %s651_s16 }
  0x1e   : > { %299 = vmatpush1.msra.mxu0 %v255_v6  ;;  %585 = vmatpush1.msra.mxu1 %v255_v6  ;;  %v455_v6 = vlaneseq  ;;  %p654_p2 = scmp.lt.s32.totalorder %s652_s17, %s646_s15 }
  0x1f   : > { %573 = vmatmul.mubr.msk.f32.vlgmr.msra.gmra.mrb[0].mxu0 %vm285_vm0, %v257_v4  ;;  %575 = vmatmul.mubr.msk.f32.vlgmr.msra.gmra.mrb[0].mxu1 %vm285_vm0, %v259_v7  ;;  %v728_v4 = vmov 1966171168  }
  0x20   : > { %368 = vmatprep.mubr.f32.mxu0 %v726_v0  ;;  %380 = vmatprep.mubr.f32.mxu1 %v726_v0  ;;  %v453_v5 = vunpack.c.l.s4 %v728_v4  ;;  %v456_v13 = vshrl.u32 %v455_v6, 7  ;;  %vm469_vm1 = vcmp.lt.s32.totalorder %v455_v6, 256  ;;  %p655_p3 = por %p654_p2, %p653_p1 }
  0x21   : > { %411 = vperm.xlu0 %644, %v397_v14   ;;  %416 = vperm.xlu1 %645, %v398_v15  }
  0x22   : > { %v454_v12 = vunpack.c.0.s8 %v453_v5  ;;  %p656_p5 = pnand %p655_p3, %p649_p0 }
  0x23   : > { %574 = vmatmul.mubr.msk.f32.gmra.mrb[2].mxu0 %vm285_vm0, %v258_v10  ;;  %576 = vmatmul.mubr.msk.f32.gmra.mrb[2].mxu1 %vm285_vm0, %v260_v11  ;;  %v446_v10 = vstv %s445_s26 }
  0x92   : > { %v268_v16 = vpop.permute.xlu0 %267  ;;  %v278_v17 = vpop.permute.xlu1 %277 }
  0x96   : > { %v273_v18 = vpop.permute.xlu0 %272  ;;  %v283_v19 = vpop.permute.xlu1 %282 }
  0x9a   : > { %v402_v26 = vpop.permute.xlu0 %401  ;;  %v407_v36 = vpop.permute.xlu1 %406 }
  0xa0   : > { %v412_v47 = vpop.permute.xlu0 %411  ;;  %v417_v53 = vpop.permute.xlu1 %416 }
  0xf2   : > { %v364_v20 = vpop.f32.mrb[0].mxu0  ;;  %v376_v21 = vpop.f32.mrb[0].mxu1 }
  0xf3   : > { %v365_v22 = vadd.f32 %v364_v20, %v268_v16  ;;  %v366_v23 = vpop.f32.mrb[1].mxu0  ;;  %v378_v24 = vpop.f32.mrb[1].mxu1  ;;  %v377_v27 = vadd.f32 %v376_v21, %v278_v17 }
  0xf4   : > { %v367_v25 = vadd.f32 %v366_v23, %v268_v16  ;;  %v379_v28 = vadd.f32 %v378_v24, %v278_v17 }
  0xf5   : > { %v387_v31 = vmax.f32 %v365_v22, 0.0  ;;  %v391_v40 = vmax.f32 %v377_v27, 0.0 }
  0xf6   : > { %v370_v29 = vpop.f32.mrb[2].mxu0  ;;  %v382_v30 = vpop.f32.mrb[2].mxu1  ;;  %v388_v37 = vmax.f32 %v367_v25, 0.0  ;;  %v392_v42 = vmax.f32 %v379_v28, 0.0 }
  0xf7   : > { %v371_v32 = vadd.f32 %v370_v29, %v273_v18  ;;  %v383_v33 = vadd.f32 %v382_v30, %v283_v19  ;;  %v372_v34 = vpop.f32.mrb[3].mxu0  ;;  %v384_v35 = vpop.f32.mrb[3].mxu1  ;;  %v419_v44 = vmul.f32 %v402_v26, %v387_v31  ;;  %v423_v51 = vmul.f32 %v412_v47, %v391_v40 }
  0xf8   : > { %v373_v38 = vadd.f32 %v372_v34, %v273_v18  ;;  %v385_v39 = vadd.f32 %v384_v35, %v283_v19  ;;  %v420_v48 = vmul.f32 %v402_v26, %v388_v37  ;;  %v424_v54 = vmul.f32 %v412_v47, %v392_v42 }
  0xf9   : > { %v389_v41 = vmax.f32 %v371_v32, 0.0  ;;  %v393_v46 = vmax.f32 %v383_v33, 0.0  ;;  %v457_v18 = vsub.s32 %v454_v12, %v456_v13 }
  0xfa   : > { %v390_v43 = vmax.f32 %v373_v38, 0.0  ;;  %v394_v50 = vmax.f32 %v385_v39, 0.0 }
  0xfb   : > { %v421_v45 = vmul.f32 %v407_v36, %v389_v41  ;;  %v425_v56 = vmul.f32 %v417_v53, %v393_v46 }
  0xfc   : > { %v422_v49 = vmul.f32 %v407_v36, %v390_v43  ;;  %v426_v58 = vmul.f32 %v417_v53, %v394_v50 }
  0xfd   : > { %v427_v52 = vadd.f32 %v421_v45, %v419_v44 }
  0xfe   : > { %v436_v55 = vadd.f32 %v422_v49, %v420_v48 }
  0xff   : > { %v428_v57 = vadd.f32 %v427_v52, %v423_v51 }
 0x100   : > { %v437_v59 = vadd.f32 %v436_v55, %v424_v54 }
 0x101   : > { %v429_v60 = vadd.f32 %v428_v57, %v425_v56 }
 0x102   : > { %v438_v61 = vadd.f32 %v437_v59, %v426_v58 }
 0x103   : > { %v430_v62 = vrot.slane %v429_v60, 4 }
 0x104   : > { %v439_v63 = vrot.slane %v438_v61, 4 }
 0x105   : > { %v431_v0 = vadd.f32 %v430_v62, %v429_v60 }
 0x106   : > { %v440_v1 = vadd.f32 %v439_v63, %v438_v61 }
 0x107   : > { %v432_v2 = vrot.slane %v431_v0, 2 }
 0x108   : > { %v441_v3 = vrot.slane %v440_v1, 2 }
 0x109   : > { %v433_v7 = vadd.f32 %v432_v2, %v431_v0 }
 0x10a   : > { %v442_v8 = vadd.f32 %v441_v3, %v440_v1 }
 0x10b   : > { %v434_v9 = vrot.slane %v433_v7, 1 }
 0x10c   : > { %v443_v11 = vrot.slane %v442_v8, 1 }
 0x10d   : > { %v435_v14 = vadd.f32 %v434_v9, %v433_v7 }
 0x10e   : > { %v444_v15 = vadd.f32 %v443_v11, %v442_v8 }
 0x10f   : > { %v447_v16 = vadd.f32 %v446_v10, %v435_v14 }
 0x110   : > { %v448_v17 = vadd.f32 %v446_v10, %v444_v15 }
 0x112   : > { %v451_v19 = vcombine.low %v447_v16, %v448_v17 }
 0x114   : > { %v458_v20 = vrot.slane %v451_v19, %v457_v18 }
 0x116   : > { %v465_v21 = vrot.slane %v458_v20, %v457_v18 }
 0x118   : > { %471 = vst.msk [vmem:[%s243_s9] sm:$0x3] %vm469_vm1, %v465_v21 }
 0x119   : > { %659 = shalt.err (!%p656_p5)
}
 0x11a   : > { %s660_s18 = scalar_lea.hbm %s868_s13, 32  ;;  %s664_s26 = scalar_lea.hbm %s920_s5, 64 }
 0x11b   : > { %p661_p6 = scmp.ne.s32.totalorder %s868_s13, %s660_s18  ;;  %p665_p10 = scmp.lt.u32.totalorder %s868_s13, %s920_s5 }
 0x11c   : > { %p666_p11 = scmp.lt.u32.totalorder %s664_s26, %s660_s18  ;;  %p668_p13 = scmp.lt.u32.totalorder %s660_s18, %s868_s13 }
 0x11d   : > { %p662_p7 = pnand %p661_p6, %p803_p4 }
 0x11e   : > { %p667_p12 = por %p666_p11, %p665_p10 }
 0x11f   : > { %p663_p9 = pneg %p662_p7 }
 0x120   : > { %p669_p0 = por %p668_p13, %p667_p12 }
 0x122   : > { %p670_p1 = pnand %p669_p0, %p663_p9 }
 0x124   : > { %673 = shalt.err (!%p670_p1)
}
 0x125   : > { %586 = dma.vmem_to_hbm [thread:$0]  (%p803_p4), %s870_s10, 32, %s868_s13, %s473_s14  }
 0x126 PF: > { %p592_p2 = scmp.ge.s32.totalorder %s724_s25, 2  ;;  %s501_s8 = sand.u32 1, %s704_s20  }
 0x127   : > { %s502_s9 = scalar_lea.sflag [#allocation4], %s501_s8 }
 0x128   : > { %p589_p3 = pnand %p592_p2, %p810_p8 }
 0x12a   : > { %699 = dma.done.wait (!%p589_p3), %s502_s9, 32  }
 0x12b   : > { %701 = vsyncadd (!%p589_p3), %s502_s9, 4294967264  ;;  %s19_s25 = sadd.s32 1, %s724_s25   ;;  %s923_s20 = smov %s708_s21 }
 0x12c   : > { %p16_p5 = scmp.ge.s32.totalorder %s19_s25, 4   ;;  %s924_s21 = smov %s712_s22 }
 0x12d   : > { %s925_s22 = smov %s816_s7  ;;  %s926_s23 = smov %s720_s24 }
 0x12e   : > { %s927_s24 = smov %s929_s27  ;;  %18 = sbr.rel (!%p16_p5) target bundleno = 6 (0x6), region = 75 }
 0x135   :  { %507 = vsyncpa [#allocation4], 1 }
 0x136   :  { %509 = vsyncpa [#allocation4 + $0x1], 1 }

</bundles_post_ra>
